<compile_context>
chip_gen: v7x
topology: tpu7x:2x2x1
jax: 0.10.0
libtpu: 0.0.40
codegen_flags: <defaults>
</compile_context>

<pallas_src>
import jax
import jax.numpy as jnp
from jax.experimental import pallas as pl
from jax.experimental.pallas import tpu as pltpu

NUM_ITERATIONS = 5
IN_DIM = 784
HIDDEN = 128
OUT_DIM = 10
OUT_PAD = 128            # lane-dense fc2 output width (sliced to OUT_DIM outside)
LN_EPS = 1e-5            # PyTorch nn.LayerNorm default
MIN_SPLIT_ROWS = 256     # only force >=2 grid steps when each half-tile >= 128 rows


def _round_up(n, m):
    return ((n + m - 1) // m) * m


def _choose_batch_tile(B, block_b):
    """Batch tile: multiple of 8, large, and >=2 grid steps for big batches."""
    tb = min(block_b, _round_up(B, 8))
    tb = max(8, _round_up(tb, 8))
    b_pad = _round_up(B, tb)
    if b_pad // tb < 2 and B >= MIN_SPLIT_ROWS:
        # Split so the "parallel" grid axis shards across v7x's 2 TensorCores.
        tb = _round_up((b_pad + 1) // 2, 8)
        b_pad = _round_up(B, tb)
    return tb, b_pad


def fractalnet_kernel(x_ref, w1_ref, b1_ref, wf_ref, bf_ref,
                      gamma_ref, beta_ref, w2_ref, b2_ref, out_ref):
    x = x_ref[...]                      # (TB, K)  f32 or bf16
    w1 = w1_ref[...]                    # (K, 128)
    wf = wf_ref[...]                    # (128, 128)
    w2 = w2_ref[...]                    # (128, OUT_PAD)
    b1 = b1_ref[...]                    # (1, 128)  f32
    bf = bf_ref[...]                    # (1, 128)  f32
    gamma = gamma_ref[...]              # (1, 128)  f32
    beta = beta_ref[...]                # (1, 128)  f32
    b2 = b2_ref[...]                    # (1, OUT_PAD) f32

    mxu_dtype = wf.dtype                # MXU operand dtype (f32 or bf16)
    inv_h = jnp.float32(1.0 / HIDDEN)

    # fc1 + ReLU (f32 accumulation regardless of operand dtype).
    h = jnp.dot(x.astype(mxu_dtype), w1, preferred_element_type=jnp.float32)
    h = jnp.maximum(h + b1, 0.0)

    # FractalLayer: 5 unrolled, serially dependent iterations.
    for _ in range(NUM_ITERATIONS):
        h = jnp.dot(h.astype(mxu_dtype), wf,
                    preferred_element_type=jnp.float32) + bf
        h = h * h + h
        # Two-pass LayerNorm (numerically safe); XLU row sums + EUP rsqrt.
        mean = jnp.sum(h, axis=-1, keepdims=True) * inv_h
        d = h - mean
        var = jnp.sum(d * d, axis=-1, keepdims=True) * inv_h
        h = d * jax.lax.rsqrt(var + LN_EPS)
        h = jnp.maximum(h * gamma + beta, 0.0)

    # fc2 (lane-dense, zero-padded to 128 output columns; sliced outside).
    out = jnp.dot(h.astype(mxu_dtype), w2, preferred_element_type=jnp.float32)
    out_ref[...] = out + b2


def fractalnet_forward(x, params, *, block_b=512, use_bf16=False, pad_k=False):
    """x: (B, 784) float32.  params: dict of pre-transposed (in, out) weights.

    use_bf16: bf16 MXU operands (f32 accumulate) - 2-3x matmul on v6e/v7x,
              halves the x DMA stream on v5e; relax the parity tolerance.
    pad_k:    pad fc1 contraction dim 784 -> 896 (compute-bound chips only).
    """
    B = x.shape[0]
    assert x.shape[1] == IN_DIM

    w1, wf = params["w1"], params["wf"]
    b1, bf = params["b1"], params["bf"]
    gamma, beta = params["gamma"], params["beta"]

    # Lane-dense fc2: zero-pad the 10-wide projection to 128 lanes.
    w2p = jnp.pad(params["w2"], ((0, 0), (0, OUT_PAD - OUT_DIM)))
    b2p = jnp.pad(params["b2"], ((0, 0), (0, OUT_PAD - OUT_DIM)))

    # Optional fc1 contraction-dim padding to a lane multiple (v6e/v7x).
    if pad_k:
        k_dim = _round_up(IN_DIM, 128)
        x = jnp.pad(x, ((0, 0), (0, k_dim - IN_DIM)))
        w1 = jnp.pad(w1, ((0, k_dim - IN_DIM), (0, 0)))
    else:
        k_dim = IN_DIM

    # Optional bf16 MXU-operand path (elementwise / LN math stays f32).
    if use_bf16:
        x = x.astype(jnp.bfloat16)
        w1 = w1.astype(jnp.bfloat16)
        wf = wf.astype(jnp.bfloat16)
        w2p = w2p.astype(jnp.bfloat16)

    tb, b_pad = _choose_batch_tile(B, block_b)
    if b_pad != B:
        x = jnp.pad(x, ((0, b_pad - B), (0, 0)))

    grid = (b_pad // tb,)
    tile_map = lambda i: (i, 0)     # batch-tiled operands
    const_map = lambda i: (0, 0)    # VMEM-resident weights (fetched once)

    itemsize = x.dtype.itemsize
    param_bytes = sum(int(a.size) * a.dtype.itemsize
                      for a in (w1, b1, wf, bf, gamma, beta, w2p, b2p))
    # Explicit scoped-VMEM budget: double-buffered x / out tiles + resident
    # params (worst case 2x) + headroom for kernel temporaries.
    vmem_need = (2 * tb * k_dim * itemsize
                 + 2 * tb * OUT_PAD * 4
                 + 2 * param_bytes
                 + (16 << 20))
    vmem_limit = int(min(64 << 20, max(32 << 20, vmem_need)))

    flops = 2 * b_pad * (k_dim * HIDDEN
                         + NUM_ITERATIONS * HIDDEN * HIDDEN
                         + HIDDEN * OUT_PAD)
    bytes_accessed = (int(x.size) * itemsize + param_bytes
                      + b_pad * OUT_PAD * 4)

    out = pl.pallas_call(
        fractalnet_kernel,
        out_shape=jax.ShapeDtypeStruct((b_pad, OUT_PAD), jnp.float32),
        grid_spec=pltpu.PrefetchScalarGridSpec(
            num_scalar_prefetch=0,
            grid=grid,
            in_specs=[
                pl.BlockSpec((tb, k_dim), tile_map),         # x tile (streamed)
                pl.BlockSpec((k_dim, HIDDEN), const_map),    # w1 (resident)
                pl.BlockSpec((1, HIDDEN), const_map),        # b1
                pl.BlockSpec((HIDDEN, HIDDEN), const_map),   # wf
                pl.BlockSpec((1, HIDDEN), const_map),        # bf
                pl.BlockSpec((1, HIDDEN), const_map),        # gamma
                pl.BlockSpec((1, HIDDEN), const_map),        # beta
                pl.BlockSpec((HIDDEN, OUT_PAD), const_map),  # w2 (padded)
                pl.BlockSpec((1, OUT_PAD), const_map),       # b2 (padded)
            ],
            out_specs=pl.BlockSpec((tb, OUT_PAD), tile_map),
        ),
        compiler_params=pltpu.CompilerParams(
            dimension_semantics=("parallel",),
            vmem_limit_bytes=vmem_limit),
        cost_estimate=pl.CostEstimate(
            flops=flops,
            transcendentals=NUM_ITERATIONS * b_pad,
            bytes_accessed=bytes_accessed),
    )(x, w1, b1, wf, bf, gamma, beta, w2p, b2p)

    return out[:B, :OUT_DIM]


def init_params(key):
    """Deterministic synthetic parameters (PyTorch-Linear-like uniform init)."""
    ks = jax.random.split(key, 3)

    def lin(k, fan_in, fan_out):
        bound = 1.0 / jnp.sqrt(fan_in)
        kw, kb = jax.random.split(k)
        # stored already transposed: (in, out)
        w = jax.random.uniform(kw, (fan_in, fan_out), jnp.float32, -bound, bound)
        b = jax.random.uniform(kb, (1, fan_out), jnp.float32, -bound, bound)
        return w, b

    w1, b1 = lin(ks[0], IN_DIM, HIDDEN)
    wf, bf = lin(ks[1], HIDDEN, HIDDEN)
    w2, b2 = lin(ks[2], HIDDEN, OUT_DIM)
    gamma = jnp.ones((1, HIDDEN), jnp.float32)   # nn.LayerNorm default weight
    beta = jnp.zeros((1, HIDDEN), jnp.float32)   # nn.LayerNorm default bias
    return dict(w1=w1, b1=b1, wf=wf, bf=bf, gamma=gamma, beta=beta,
                w2=w2, b2=b2)


def reference_forward(x, p, mxu_dtype=jnp.float32):
    """Pure-JAX reference of the PyTorch forward (two-pass LayerNorm)."""
    def dot(a, b):
        return jnp.dot(a.astype(mxu_dtype), b.astype(mxu_dtype),
                       preferred_element_type=jnp.float32)

    h = jnp.maximum(dot(x, p["w1"]) + p["b1"], 0.0)
    for _ in range(NUM_ITERATIONS):
        h = dot(h, p["wf"]) + p["bf"]
        h = h * h + h
        mean = jnp.mean(h, axis=-1, keepdims=True)
        var = jnp.mean((h - mean) ** 2, axis=-1, keepdims=True)
        h = (h - mean) / jnp.sqrt(var + LN_EPS)
        h = jnp.maximum(h * p["gamma"] + p["beta"], 0.0)
    return dot(h, p["w2"]) + p["b2"]


if __name__ == "__main__":
    key = jax.random.PRNGKey(0)
    kx, kp = jax.random.split(key)
    params = init_params(kp)

    # 1) Small batch, f32 path (1e-4 parity vs the PyTorch-faithful reference).
    B = 8
    x = jax.random.normal(kx, (B, IN_DIM), jnp.float32)
    out = jax.block_until_ready(fractalnet_forward(x, params))
    ref = reference_forward(x, params)
    assert out.shape == (B, OUT_DIM)
    assert jnp.allclose(out, ref, atol=1e-4, rtol=1e-4), "mismatch vs reference"

    # 2) Batch grid + padding path (B not a multiple of the tile).
    B2 = 40
    x2 = jax.random.normal(jax.random.fold_in(kx, 1), (B2, IN_DIM), jnp.float32)
    out2 = jax.block_until_ready(fractalnet_forward(x2, params, block_b=16))
    ref2 = reference_forward(x2, params)
    assert out2.shape == (B2, OUT_DIM)
    assert jnp.allclose(out2, ref2, atol=1e-4, rtol=1e-4), "mismatch (gridded)"

    # 3) Forced >=2 grid steps (v7x two-TC sharding) + padded-K fc1 path.
    B3 = 300
    x3 = jax.random.normal(jax.random.fold_in(kx, 2), (B3, IN_DIM), jnp.float32)
    out3 = jax.block_until_ready(fractalnet_forward(x3, params, pad_k=True))
    ref3 = reference_forward(x3, params)
    assert out3.shape == (B3, OUT_DIM)
    assert jnp.allclose(out3, ref3, atol=1e-4, rtol=1e-4), "mismatch (pad_k)"

    # 4) bf16 MXU-operand path, checked against a matching bf16-operand
    #    reference with a relaxed tolerance.
    out4 = jax.block_until_ready(fractalnet_forward(x2, params, use_bf16=True))
    ref4 = reference_forward(x2, params, mxu_dtype=jnp.bfloat16)
    assert out4.shape == (B2, OUT_DIM)
    assert bool(jnp.all(jnp.isfinite(out4))), "non-finite bf16 output"
    assert jnp.allclose(out4, ref4, atol=1e-2, rtol=1e-2), "mismatch (bf16)"

    print("KERNEL_OK")
</pallas_src>

<mosaic_0001>
module attributes {stable_mosaic.version = 11 : i64} {
  func.func @fractalnet_kernel(%arg0: i32, %arg1: memref<8x784xf32, #tpu.memory_space<vmem>>, %arg2: memref<784x128xf32, #tpu.memory_space<vmem>>, %arg3: memref<1x128xf32, #tpu.memory_space<vmem>>, %arg4: memref<128x128xf32, #tpu.memory_space<vmem>>, %arg5: memref<1x128xf32, #tpu.memory_space<vmem>>, %arg6: memref<1x128xf32, #tpu.memory_space<vmem>>, %arg7: memref<1x128xf32, #tpu.memory_space<vmem>>, %arg8: memref<128x128xf32, #tpu.memory_space<vmem>>, %arg9: memref<1x128xf32, #tpu.memory_space<vmem>>, %arg10: memref<8x128xf32, #tpu.memory_space<vmem>>) attributes {dimension_semantics = [#tpu.dimension_semantics<parallel>], iteration_bounds = array<i64: 1>, scalar_prefetch = 0 : i64, scratch_operands = 0 : i64, tpu.core_type = #tpu.core_type<tc>, window_params = [{transform_indices = @transform_0, window_bounds = array<i64: 8, 784>}, {pipeline_mode = #tpu.pipeline_mode<synchronous>, transform_indices = @transform_1, window_bounds = array<i64: 784, 128>}, {pipeline_mode = #tpu.pipeline_mode<synchronous>, transform_indices = @transform_2, window_bounds = array<i64: 1, 128>}, {pipeline_mode = #tpu.pipeline_mode<synchronous>, transform_indices = @transform_3, window_bounds = array<i64: 128, 128>}, {pipeline_mode = #tpu.pipeline_mode<synchronous>, transform_indices = @transform_4, window_bounds = array<i64: 1, 128>}, {pipeline_mode = #tpu.pipeline_mode<synchronous>, transform_indices = @transform_5, window_bounds = array<i64: 1, 128>}, {pipeline_mode = #tpu.pipeline_mode<synchronous>, transform_indices = @transform_6, window_bounds = array<i64: 1, 128>}, {pipeline_mode = #tpu.pipeline_mode<synchronous>, transform_indices = @transform_7, window_bounds = array<i64: 128, 128>}, {pipeline_mode = #tpu.pipeline_mode<synchronous>, transform_indices = @transform_8, window_bounds = array<i64: 1, 128>}, {transform_indices = @transform_9, window_bounds = array<i64: 8, 128>}]} {
    %c0 = arith.constant 0 : index
    %c0_0 = arith.constant 0 : index
    %0 = vector.load %arg1[%c0, %c0_0] : memref<8x784xf32, #tpu.memory_space<vmem>>, vector<8x784xf32>
    %c0_1 = arith.constant 0 : index
    %c0_2 = arith.constant 0 : index
    %1 = vector.load %arg2[%c0_1, %c0_2] : memref<784x128xf32, #tpu.memory_space<vmem>>, vector<784x128xf32>
    %c0_3 = arith.constant 0 : index
    %c0_4 = arith.constant 0 : index
    %2 = vector.load %arg4[%c0_3, %c0_4] : memref<128x128xf32, #tpu.memory_space<vmem>>, vector<128x128xf32>
    %c0_5 = arith.constant 0 : index
    %c0_6 = arith.constant 0 : index
    %3 = vector.load %arg8[%c0_5, %c0_6] : memref<128x128xf32, #tpu.memory_space<vmem>>, vector<128x128xf32>
    %c0_7 = arith.constant 0 : index
    %c0_8 = arith.constant 0 : index
    %4 = vector.load %arg3[%c0_7, %c0_8] : memref<1x128xf32, #tpu.memory_space<vmem>>, vector<1x128xf32>
    %c0_9 = arith.constant 0 : index
    %c0_10 = arith.constant 0 : index
    %5 = vector.load %arg5[%c0_9, %c0_10] : memref<1x128xf32, #tpu.memory_space<vmem>>, vector<1x128xf32>
    %c0_11 = arith.constant 0 : index
    %c0_12 = arith.constant 0 : index
    %6 = vector.load %arg6[%c0_11, %c0_12] : memref<1x128xf32, #tpu.memory_space<vmem>>, vector<1x128xf32>
    %c0_13 = arith.constant 0 : index
    %c0_14 = arith.constant 0 : index
    %7 = vector.load %arg7[%c0_13, %c0_14] : memref<1x128xf32, #tpu.memory_space<vmem>>, vector<1x128xf32>
    %c0_15 = arith.constant 0 : index
    %c0_16 = arith.constant 0 : index
    %8 = vector.load %arg9[%c0_15, %c0_16] : memref<1x128xf32, #tpu.memory_space<vmem>>, vector<1x128xf32>
    %cst = arith.constant dense<0.000000e+00> : vector<8x128xf32>
    %9 = tpu.matmul %0, %1, %cst {dimension_numbers = #tpu.dot_dimension_numbers<[1], [0], [0], [1], [0, 0, 1, 1], [], []>} : vector<8x784xf32>, vector<784x128xf32>, vector<8x128xf32> -> vector<8x128xf32>
    %10 = vector.broadcast %4 : vector<1x128xf32> to vector<8x128xf32>
    %11 = arith.addf %9, %10 : vector<8x128xf32>
    %cst_17 = arith.constant 0.000000e+00 : f32
    %12 = vector.broadcast %cst_17 : f32 to vector<8x128xf32>
    %13 = arith.maximumf %11, %12 : vector<8x128xf32>
    %cst_18 = arith.constant dense<0.000000e+00> : vector<8x128xf32>
    %14 = tpu.matmul %13, %2, %cst_18 {dimension_numbers = #tpu.dot_dimension_numbers<[1], [0], [0], [1], [0, 0, 1, 1], [], []>} : vector<8x128xf32>, vector<128x128xf32>, vector<8x128xf32> -> vector<8x128xf32>
    %15 = vector.broadcast %5 : vector<1x128xf32> to vector<8x128xf32>
    %16 = arith.addf %14, %15 : vector<8x128xf32>
    %17 = arith.mulf %16, %16 : vector<8x128xf32>
    %18 = arith.addf %17, %16 : vector<8x128xf32>
    %cst_19 = arith.constant dense<0.000000e+00> : vector<8xf32>
    %19 = vector.multi_reduction <add>, %18, %cst_19 [1] : vector<8x128xf32> to vector<8xf32>
    %20 = vector.shape_cast %19 : vector<8xf32> to vector<8x1xf32>
    %cst_20 = arith.constant 7.812500e-03 : f32
    %21 = vector.broadcast %cst_20 : f32 to vector<8x1xf32>
    %22 = arith.mulf %20, %21 : vector<8x1xf32>
    %23 = vector.broadcast %22 : vector<8x1xf32> to vector<8x128xf32>
    %24 = arith.subf %18, %23 : vector<8x128xf32>
    %25 = arith.mulf %24, %24 : vector<8x128xf32>
    %cst_21 = arith.constant dense<0.000000e+00> : vector<8xf32>
    %26 = vector.multi_reduction <add>, %25, %cst_21 [1] : vector<8x128xf32> to vector<8xf32>
    %27 = vector.shape_cast %26 : vector<8xf32> to vector<8x1xf32>
    %cst_22 = arith.constant 7.812500e-03 : f32
    %28 = vector.broadcast %cst_22 : f32 to vector<8x1xf32>
    %29 = arith.mulf %27, %28 : vector<8x1xf32>
    %cst_23 = arith.constant 9.99999974E-6 : f32
    %30 = vector.broadcast %cst_23 : f32 to vector<8x1xf32>
    %31 = arith.addf %29, %30 : vector<8x1xf32>
    %32 = math.rsqrt %31 : vector<8x1xf32>
    %33 = vector.broadcast %32 : vector<8x1xf32> to vector<8x128xf32>
    %34 = arith.mulf %24, %33 : vector<8x128xf32>
    %35 = vector.broadcast %6 : vector<1x128xf32> to vector<8x128xf32>
    %36 = arith.mulf %34, %35 : vector<8x128xf32>
    %37 = vector.broadcast %7 : vector<1x128xf32> to vector<8x128xf32>
    %38 = arith.addf %36, %37 : vector<8x128xf32>
    %cst_24 = arith.constant 0.000000e+00 : f32
    %39 = vector.broadcast %cst_24 : f32 to vector<8x128xf32>
    %40 = arith.maximumf %38, %39 : vector<8x128xf32>
    %cst_25 = arith.constant dense<0.000000e+00> : vector<8x128xf32>
    %41 = tpu.matmul %40, %2, %cst_25 {dimension_numbers = #tpu.dot_dimension_numbers<[1], [0], [0], [1], [0, 0, 1, 1], [], []>} : vector<8x128xf32>, vector<128x128xf32>, vector<8x128xf32> -> vector<8x128xf32>
    %42 = vector.broadcast %5 : vector<1x128xf32> to vector<8x128xf32>
    %43 = arith.addf %41, %42 : vector<8x128xf32>
    %44 = arith.mulf %43, %43 : vector<8x128xf32>
    %45 = arith.addf %44, %43 : vector<8x128xf32>
    %cst_26 = arith.constant dense<0.000000e+00> : vector<8xf32>
    %46 = vector.multi_reduction <add>, %45, %cst_26 [1] : vector<8x128xf32> to vector<8xf32>
    %47 = vector.shape_cast %46 : vector<8xf32> to vector<8x1xf32>
    %cst_27 = arith.constant 7.812500e-03 : f32
    %48 = vector.broadcast %cst_27 : f32 to vector<8x1xf32>
    %49 = arith.mulf %47, %48 : vector<8x1xf32>
    %50 = vector.broadcast %49 : vector<8x1xf32> to vector<8x128xf32>
    %51 = arith.subf %45, %50 : vector<8x128xf32>
    %52 = arith.mulf %51, %51 : vector<8x128xf32>
    %cst_28 = arith.constant dense<0.000000e+00> : vector<8xf32>
    %53 = vector.multi_reduction <add>, %52, %cst_28 [1] : vector<8x128xf32> to vector<8xf32>
    %54 = vector.shape_cast %53 : vector<8xf32> to vector<8x1xf32>
    %cst_29 = arith.constant 7.812500e-03 : f32
    %55 = vector.broadcast %cst_29 : f32 to vector<8x1xf32>
    %56 = arith.mulf %54, %55 : vector<8x1xf32>
    %cst_30 = arith.constant 9.99999974E-6 : f32
    %57 = vector.broadcast %cst_30 : f32 to vector<8x1xf32>
    %58 = arith.addf %56, %57 : vector<8x1xf32>
    %59 = math.rsqrt %58 : vector<8x1xf32>
    %60 = vector.broadcast %59 : vector<8x1xf32> to vector<8x128xf32>
    %61 = arith.mulf %51, %60 : vector<8x128xf32>
    %62 = vector.broadcast %6 : vector<1x128xf32> to vector<8x128xf32>
    %63 = arith.mulf %61, %62 : vector<8x128xf32>
    %64 = vector.broadcast %7 : vector<1x128xf32> to vector<8x128xf32>
    %65 = arith.addf %63, %64 : vector<8x128xf32>
    %cst_31 = arith.constant 0.000000e+00 : f32
    %66 = vector.broadcast %cst_31 : f32 to vector<8x128xf32>
    %67 = arith.maximumf %65, %66 : vector<8x128xf32>
    %cst_32 = arith.constant dense<0.000000e+00> : vector<8x128xf32>
    %68 = tpu.matmul %67, %2, %cst_32 {dimension_numbers = #tpu.dot_dimension_numbers<[1], [0], [0], [1], [0, 0, 1, 1], [], []>} : vector<8x128xf32>, vector<128x128xf32>, vector<8x128xf32> -> vector<8x128xf32>
    %69 = vector.broadcast %5 : vector<1x128xf32> to vector<8x128xf32>
    %70 = arith.addf %68, %69 : vector<8x128xf32>
    %71 = arith.mulf %70, %70 : vector<8x128xf32>
    %72 = arith.addf %71, %70 : vector<8x128xf32>
    %cst_33 = arith.constant dense<0.000000e+00> : vector<8xf32>
    %73 = vector.multi_reduction <add>, %72, %cst_33 [1] : vector<8x128xf32> to vector<8xf32>
    %74 = vector.shape_cast %73 : vector<8xf32> to vector<8x1xf32>
    %cst_34 = arith.constant 7.812500e-03 : f32
    %75 = vector.broadcast %cst_34 : f32 to vector<8x1xf32>
    %76 = arith.mulf %74, %75 : vector<8x1xf32>
    %77 = vector.broadcast %76 : vector<8x1xf32> to vector<8x128xf32>
    %78 = arith.subf %72, %77 : vector<8x128xf32>
    %79 = arith.mulf %78, %78 : vector<8x128xf32>
    %cst_35 = arith.constant dense<0.000000e+00> : vector<8xf32>
    %80 = vector.multi_reduction <add>, %79, %cst_35 [1] : vector<8x128xf32> to vector<8xf32>
    %81 = vector.shape_cast %80 : vector<8xf32> to vector<8x1xf32>
    %cst_36 = arith.constant 7.812500e-03 : f32
    %82 = vector.broadcast %cst_36 : f32 to vector<8x1xf32>
    %83 = arith.mulf %81, %82 : vector<8x1xf32>
    %cst_37 = arith.constant 9.99999974E-6 : f32
    %84 = vector.broadcast %cst_37 : f32 to vector<8x1xf32>
    %85 = arith.addf %83, %84 : vector<8x1xf32>
    %86 = math.rsqrt %85 : vector<8x1xf32>
    %87 = vector.broadcast %86 : vector<8x1xf32> to vector<8x128xf32>
    %88 = arith.mulf %78, %87 : vector<8x128xf32>
    %89 = vector.broadcast %6 : vector<1x128xf32> to vector<8x128xf32>
    %90 = arith.mulf %88, %89 : vector<8x128xf32>
    %91 = vector.broadcast %7 : vector<1x128xf32> to vector<8x128xf32>
    %92 = arith.addf %90, %91 : vector<8x128xf32>
    %cst_38 = arith.constant 0.000000e+00 : f32
    %93 = vector.broadcast %cst_38 : f32 to vector<8x128xf32>
    %94 = arith.maximumf %92, %93 : vector<8x128xf32>
    %cst_39 = arith.constant dense<0.000000e+00> : vector<8x128xf32>
    %95 = tpu.matmul %94, %2, %cst_39 {dimension_numbers = #tpu.dot_dimension_numbers<[1], [0], [0], [1], [0, 0, 1, 1], [], []>} : vector<8x128xf32>, vector<128x128xf32>, vector<8x128xf32> -> vector<8x128xf32>
    %96 = vector.broadcast %5 : vector<1x128xf32> to vector<8x128xf32>
    %97 = arith.addf %95, %96 : vector<8x128xf32>
    %98 = arith.mulf %97, %97 : vector<8x128xf32>
    %99 = arith.addf %98, %97 : vector<8x128xf32>
    %cst_40 = arith.constant dense<0.000000e+00> : vector<8xf32>
    %100 = vector.multi_reduction <add>, %99, %cst_40 [1] : vector<8x128xf32> to vector<8xf32>
    %101 = vector.shape_cast %100 : vector<8xf32> to vector<8x1xf32>
    %cst_41 = arith.constant 7.812500e-03 : f32
    %102 = vector.broadcast %cst_41 : f32 to vector<8x1xf32>
    %103 = arith.mulf %101, %102 : vector<8x1xf32>
    %104 = vector.broadcast %103 : vector<8x1xf32> to vector<8x128xf32>
    %105 = arith.subf %99, %104 : vector<8x128xf32>
    %106 = arith.mulf %105, %105 : vector<8x128xf32>
    %cst_42 = arith.constant dense<0.000000e+00> : vector<8xf32>
    %107 = vector.multi_reduction <add>, %106, %cst_42 [1] : vector<8x128xf32> to vector<8xf32>
    %108 = vector.shape_cast %107 : vector<8xf32> to vector<8x1xf32>
    %cst_43 = arith.constant 7.812500e-03 : f32
    %109 = vector.broadcast %cst_43 : f32 to vector<8x1xf32>
    %110 = arith.mulf %108, %109 : vector<8x1xf32>
    %cst_44 = arith.constant 9.99999974E-6 : f32
    %111 = vector.broadcast %cst_44 : f32 to vector<8x1xf32>
    %112 = arith.addf %110, %111 : vector<8x1xf32>
    %113 = math.rsqrt %112 : vector<8x1xf32>
    %114 = vector.broadcast %113 : vector<8x1xf32> to vector<8x128xf32>
    %115 = arith.mulf %105, %114 : vector<8x128xf32>
    %116 = vector.broadcast %6 : vector<1x128xf32> to vector<8x128xf32>
    %117 = arith.mulf %115, %116 : vector<8x128xf32>
    %118 = vector.broadcast %7 : vector<1x128xf32> to vector<8x128xf32>
    %119 = arith.addf %117, %118 : vector<8x128xf32>
    %cst_45 = arith.constant 0.000000e+00 : f32
    %120 = vector.broadcast %cst_45 : f32 to vector<8x128xf32>
    %121 = arith.maximumf %119, %120 : vector<8x128xf32>
    %cst_46 = arith.constant dense<0.000000e+00> : vector<8x128xf32>
    %122 = tpu.matmul %121, %2, %cst_46 {dimension_numbers = #tpu.dot_dimension_numbers<[1], [0], [0], [1], [0, 0, 1, 1], [], []>} : vector<8x128xf32>, vector<128x128xf32>, vector<8x128xf32> -> vector<8x128xf32>
    %123 = vector.broadcast %5 : vector<1x128xf32> to vector<8x128xf32>
    %124 = arith.addf %122, %123 : vector<8x128xf32>
    %125 = arith.mulf %124, %124 : vector<8x128xf32>
    %126 = arith.addf %125, %124 : vector<8x128xf32>
    %cst_47 = arith.constant dense<0.000000e+00> : vector<8xf32>
    %127 = vector.multi_reduction <add>, %126, %cst_47 [1] : vector<8x128xf32> to vector<8xf32>
    %128 = vector.shape_cast %127 : vector<8xf32> to vector<8x1xf32>
    %cst_48 = arith.constant 7.812500e-03 : f32
    %129 = vector.broadcast %cst_48 : f32 to vector<8x1xf32>
    %130 = arith.mulf %128, %129 : vector<8x1xf32>
    %131 = vector.broadcast %130 : vector<8x1xf32> to vector<8x128xf32>
    %132 = arith.subf %126, %131 : vector<8x128xf32>
    %133 = arith.mulf %132, %132 : vector<8x128xf32>
    %cst_49 = arith.constant dense<0.000000e+00> : vector<8xf32>
    %134 = vector.multi_reduction <add>, %133, %cst_49 [1] : vector<8x128xf32> to vector<8xf32>
    %135 = vector.shape_cast %134 : vector<8xf32> to vector<8x1xf32>
    %cst_50 = arith.constant 7.812500e-03 : f32
    %136 = vector.broadcast %cst_50 : f32 to vector<8x1xf32>
    %137 = arith.mulf %135, %136 : vector<8x1xf32>
    %cst_51 = arith.constant 9.99999974E-6 : f32
    %138 = vector.broadcast %cst_51 : f32 to vector<8x1xf32>
    %139 = arith.addf %137, %138 : vector<8x1xf32>
    %140 = math.rsqrt %139 : vector<8x1xf32>
    %141 = vector.broadcast %140 : vector<8x1xf32> to vector<8x128xf32>
    %142 = arith.mulf %132, %141 : vector<8x128xf32>
    %143 = vector.broadcast %6 : vector<1x128xf32> to vector<8x128xf32>
    %144 = arith.mulf %142, %143 : vector<8x128xf32>
    %145 = vector.broadcast %7 : vector<1x128xf32> to vector<8x128xf32>
    %146 = arith.addf %144, %145 : vector<8x128xf32>
    %cst_52 = arith.constant 0.000000e+00 : f32
    %147 = vector.broadcast %cst_52 : f32 to vector<8x128xf32>
    %148 = arith.maximumf %146, %147 : vector<8x128xf32>
    %cst_53 = arith.constant dense<0.000000e+00> : vector<8x128xf32>
    %149 = tpu.matmul %148, %3, %cst_53 {dimension_numbers = #tpu.dot_dimension_numbers<[1], [0], [0], [1], [0, 0, 1, 1], [], []>} : vector<8x128xf32>, vector<128x128xf32>, vector<8x128xf32> -> vector<8x128xf32>
    %150 = vector.broadcast %8 : vector<1x128xf32> to vector<8x128xf32>
    %151 = arith.addf %149, %150 : vector<8x128xf32>
    %c0_54 = arith.constant 0 : index
    %c0_55 = arith.constant 0 : index
    %152 = vector.load %arg10[%c0_54, %c0_55] : memref<8x128xf32, #tpu.memory_space<vmem>>, vector<8x128xf32>
    tpu.vector_store %arg10[%c0_54, %c0_55], %151 {strides = array<i32>} : memref<8x128xf32, #tpu.memory_space<vmem>>, vector<8x128xf32>,
    return
  }
  func.func @transform_0(%arg0: i32) -> (i32, i32) {
    %c0_i32 = arith.constant 0 : i32
    %c0_i32_0 = arith.constant 0 : i32
    return %arg0, %c0_i32 : i32, i32
  }
  func.func @transform_1(%arg0: i32) -> (i32, i32) {
    %c0_i32 = arith.constant 0 : i32
    %c0_i32_0 = arith.constant 0 : i32
    %c0_i32_1 = arith.constant 0 : i32
    return %c0_i32, %c0_i32_0 : i32, i32
  }
  func.func @transform_2(%arg0: i32) -> (i32, i32) {
    %c0_i32 = arith.constant 0 : i32
    %c0_i32_0 = arith.constant 0 : i32
    %c0_i32_1 = arith.constant 0 : i32
    return %c0_i32, %c0_i32_0 : i32, i32
  }
  func.func @transform_3(%arg0: i32) -> (i32, i32) {
    %c0_i32 = arith.constant 0 : i32
    %c0_i32_0 = arith.constant 0 : i32
    %c0_i32_1 = arith.constant 0 : i32
    return %c0_i32, %c0_i32_0 : i32, i32
  }
  func.func @transform_4(%arg0: i32) -> (i32, i32) {
    %c0_i32 = arith.constant 0 : i32
    %c0_i32_0 = arith.constant 0 : i32
    %c0_i32_1 = arith.constant 0 : i32
    return %c0_i32, %c0_i32_0 : i32, i32
  }
  func.func @transform_5(%arg0: i32) -> (i32, i32) {
    %c0_i32 = arith.constant 0 : i32
    %c0_i32_0 = arith.constant 0 : i32
    %c0_i32_1 = arith.constant 0 : i32
    return %c0_i32, %c0_i32_0 : i32, i32
  }
  func.func @transform_6(%arg0: i32) -> (i32, i32) {
    %c0_i32 = arith.constant 0 : i32
    %c0_i32_0 = arith.constant 0 : i32
    %c0_i32_1 = arith.constant 0 : i32
    return %c0_i32, %c0_i32_0 : i32, i32
  }
  func.func @transform_7(%arg0: i32) -> (i32, i32) {
    %c0_i32 = arith.constant 0 : i32
    %c0_i32_0 = arith.constant 0 : i32
    %c0_i32_1 = arith.constant 0 : i32
    return %c0_i32, %c0_i32_0 : i32, i32
  }
  func.func @transform_8(%arg0: i32) -> (i32, i32) {
    %c0_i32 = arith.constant 0 : i32
    %c0_i32_0 = arith.constant 0 : i32
    %c0_i32_1 = arith.constant 0 : i32
    return %c0_i32, %c0_i32_0 : i32, i32
  }
  func.func @transform_9(%arg0: i32) -> (i32, i32) {
    %c0_i32 = arith.constant 0 : i32
    %c0_i32_0 = arith.constant 0 : i32
    return %arg0, %c0_i32 : i32, i32
  }
}

</mosaic_0001>

<bundles_post_ra>
// kernel: tpu_custom_call.1
= control target key start
LH: loop header
LB: loop body
LE: loop exit
PB: predicated region body
PF: predicated region fallthrough
CT: control target
= control target key end

     0   :  { %14 = vsyncpa [#allocation3], 0  ;;  %s2159_s0 = inlined_call_operand.hbm [shape: f32[8,784], index: 0, kind: input, shape index: {}]   ;;  %s2160_s1 = inlined_call_operand.hbm [shape: f32[784,128], index: 1, kind: input, shape index: {}]   ;;  %s2161_s2 = inlined_call_operand.vmem [shape: f32[1,128], index: 2, kind: input, shape index: {}]   ;;  %s2162_s3 = inlined_call_operand.hbm [shape: f32[128,128], index: 3, kind: input, shape index: {}]   ;;  %s2163_s4 = inlined_call_operand.vmem [shape: f32[1,128], index: 4, kind: input, shape index: {}]   ;;  %s2164_s5 = inlined_call_operand.vmem [shape: f32[1,128], index: 5, kind: input, shape index: {}]   ;;  %s2165_s6 = inlined_call_operand.vmem [shape: f32[1,128], index: 6, kind: input, shape index: {}]   ;;  %s2166_s7 = inlined_call_operand.hbm [shape: f32[128,128], index: 7, kind: input, shape index: {}]   ;;  %s2167_s8 = inlined_call_operand.vmem [shape: f32[1,128], index: 8, kind: input, shape index: {}]   ;;  %s2168_s9 = inlined_call_operand.hbm [shape: f32[8,128], index: 9, kind: output, shape index: {}]  }
   0x1   :  { %15 = vsyncpa [#allocation6], 0 }
   0x2   :  { %16 = vsyncpa [#allocation9], 0 }
   0x3   :  { %17 = vsyncpa [#allocation4], 0  ;;  %s1875_s30 = smov [#allocation5]   ;;  %s1757_s13 = scalar_lea.hbm %s2160_s1, 12544 }
   0x4   :  { %s33_s10 = sshll.u32 %s1875_s30, 4  ;;  %p1758_p0 = scmp.ne.s32.totalorder %s2160_s1, %s1757_s13  ;;  %s34_s10 = int_to_ptr.vmem [resolvable:$true] %s33_s10 }
   0x5   :  { %p1761_p1 = scmp.lt.u32.totalorder %s1757_s13, %s2160_s1 }
   0x7   :  { %p1763_p2 = pnand %p1761_p1, %p1758_p0 }
   0x9   :  { %1766 = shalt.err (!%p1763_p2)
}
   0xa   :  { %s1767_s18 = scalar_lea.vmem %s34_s10, 12544  ;;  %p1772_p4 = scmp.lt.s32.totalorder %s34_s10, %s34_s10 }
   0xb   :  { %p1768_p3 = scmp.ne.s32.totalorder %s34_s10, %s1767_s18  ;;  %p1773_p5 = scmp.lt.s32.totalorder %s1767_s18, %s1767_s18 }
   0xd   :  { %p1774_p6 = por %p1773_p5, %p1772_p4 }
   0xf   :  { %p1775_p7 = pnand %p1774_p6, %p1768_p3 }
  0x11   :  { %1778 = shalt.err (!%p1775_p7)
}
  0x12   :  { %s1876_s19 = smov 128   ;;  %s1877_s20 = smov 8  }
  0x13   :  { %39 = dma.hbm_to_vmem [thread:$0]  %s2160_s1, 12544, %s34_s10, [#allocation6], %s1876_s19, %s1876_s19, %s1877_s20  }
  0x14   :  { %s1878_s23 = smov [#allocation2]   ;;  %s1879_s25 = smov [#allocation7]  }
  0x15   :  { %s24_s24 = sshll.u32 %s1878_s23, 4  ;;  %s47_s26 = sshll.u32 %s1879_s25, 4  ;;  %s25_s24 = int_to_ptr.vmem [resolvable:$true] %s24_s24  ;;  %s48_s26 = int_to_ptr.vmem [resolvable:$true] %s47_s26 }
  0x16   :  { %s1779_s29 = scalar_lea.hbm %s2159_s0, 896 }
  0x17   :  { %p1780_p8 = scmp.ne.s32.totalorder %s2159_s0, %s1779_s29  ;;  %p1783_p9 = scmp.lt.u32.totalorder %s1779_s29, %s2159_s0 }
  0x19   :  { %p1785_p10 = pnand %p1783_p9, %p1780_p8 }
  0x1b   :  { %1788 = shalt.err (!%p1785_p10)
}
  0x1c   :  { %s1789_s1 = scalar_lea.vmem %s25_s24, 896  ;;  %p1794_p12 = scmp.lt.s32.totalorder %s25_s24, %s25_s24 }
  0x1d   :  { %p1790_p11 = scmp.ne.s32.totalorder %s25_s24, %s1789_s1  ;;  %p1795_p13 = scmp.lt.s32.totalorder %s1789_s1, %s1789_s1 }
  0x1f   :  { %p1796_p0 = por %p1795_p13, %p1794_p12 }
  0x21   :  { %p1797_p1 = pnand %p1796_p0, %p1790_p11 }
  0x23   :  { %1800 = shalt.err (!%p1797_p1)
}
  0x24   :  { %27 = dma.hbm_to_vmem [thread:$0]  %s2159_s0, 896, %s25_s24, [#allocation3]  }
  0x25   :  { %s1801_s17 = scalar_lea.hbm %s2162_s3, 2048 }
  0x26   :  { %p1802_p2 = scmp.ne.s32.totalorder %s2162_s3, %s1801_s17  ;;  %p1805_p3 = scmp.lt.u32.totalorder %s1801_s17, %s2162_s3 }
  0x28   :  { %p1807_p4 = pnand %p1805_p3, %p1802_p2 }
  0x2a   :  { %1810 = shalt.err (!%p1807_p4)
}
  0x2b   :  { %s1811_s25 = scalar_lea.vmem %s48_s26, 2048  ;;  %p1816_p6 = scmp.lt.s32.totalorder %s48_s26, %s48_s26 }
  0x2c   :  { %p1812_p5 = scmp.ne.s32.totalorder %s48_s26, %s1811_s25  ;;  %p1817_p7 = scmp.lt.s32.totalorder %s1811_s25, %s1811_s25 }
  0x2e   :  { %p1818_p8 = por %p1817_p7, %p1816_p6 }
  0x30   :  { %p1819_p9 = pnand %p1818_p8, %p1812_p5 }
  0x32   :  { %1822 = shalt.err (!%p1819_p9)
}
  0x33   :  { %53 = dma.hbm_to_vmem [thread:$0]  %s2162_s3, 2048, %s48_s26, [#allocation6], %s1876_s19, %s1876_s19, %s1877_s20  }
  0x34   :  { %s1880_s27 = smov [#allocation8]   ;;  %s1823_s11 = scalar_lea.hbm %s2166_s7, 2048 }
  0x35   :  { %s65_s28 = sshll.u32 %s1880_s27, 4  ;;  %p1824_p10 = scmp.ne.s32.totalorder %s2166_s7, %s1823_s11  ;;  %s66_s28 = int_to_ptr.vmem [resolvable:$true] %s65_s28 }
  0x36   :  { %p1827_p11 = scmp.lt.u32.totalorder %s1823_s11, %s2166_s7 }
  0x38   :  { %p1829_p12 = pnand %p1827_p11, %p1824_p10 }
  0x3a   :  { %1832 = shalt.err (!%p1829_p12)
}
  0x3b   :  { %s1833_s14 = scalar_lea.vmem %s66_s28, 2048  ;;  %p1838_p0 = scmp.lt.s32.totalorder %s66_s28, %s66_s28 }
  0x3c   :  { %p1834_p13 = scmp.ne.s32.totalorder %s66_s28, %s1833_s14  ;;  %p1839_p1 = scmp.lt.s32.totalorder %s1833_s14, %s1833_s14 }
  0x3e   :  { %p1840_p2 = por %p1839_p1, %p1838_p0 }
  0x40   :  { %p1841_p3 = pnand %p1840_p2, %p1834_p13 }
  0x42   :  { %1844 = shalt.err (!%p1841_p3)
}
  0x43   :  { %71 = dma.hbm_to_vmem [thread:$0]  %s2166_s7, 2048, %s66_s28, [#allocation9], %s1876_s19, %s1876_s19, %s1877_s20  }
  0x44   :  { %1867 = dma.done.wait [#allocation3], 896  }
  0x45   :  { %1868 = vsyncadd [#allocation3], 4294966400 }
  0x46   :  { %1869 = dma.done.wait [#allocation6], 14592  }
  0x47   :  { %1870 = vsyncadd [#allocation6], 4294952704 }
  0x48   :  { %1871 = dma.done.wait [#allocation9], 2048  }
  0x49   :  { %1872 = vsyncadd [#allocation9], 4294965248  ;;  %v109_v0 = vld [vmem:[#allocation5 + $0x80] sm:$0xff]  ;;  %v110_v1 = vld [vmem:[#allocation5 + $0x88] sm:$0xff]  ;;  %vm1882_vm0 = vmmov 0   ;;  %vm234_vm1 = vcmask 130048  }
  0x4a   :  { %v93_v2 = vld [vmem:[#allocation5] sm:$0xff]  ;;  %v1494_v3 = vpack.c.bf16 %v110_v1, %v109_v0  ;;  %v94_v4 = vld [vmem:[#allocation5 + $0x8] sm:$0xff]  ;;  %v111_v11 = vld [vmem:[#allocation5 + $0x90] sm:$0xff]  ;;  %s1884_s18 = smov [#allocation10]  }
  0x4b   :  { %v141_v5 = vld [vmem:[#allocation5 + $0x180] sm:$0xff]  ;;  %v142_v6 = vld [vmem:[#allocation5 + $0x188] sm:$0xff]  ;;  %v1496_v7 = vpack.c.bf16 %v94_v4, %v93_v2  ;;  %v112_v13 = vld [vmem:[#allocation5 + $0x98] sm:$0xff]  ;;  %s1050_s21 = sshll.u32 %s1884_s18, 4  ;;  %s1051_s21 = int_to_ptr.vmem [resolvable:$true] %s1050_s21 }
  0x4c   :  { %v1526_v8 = vpack.c.bf16 %v142_v6, %v141_v5  ;;  %v125_v9 = vld [vmem:[#allocation5 + $0x100] sm:$0xff]  ;;  %v126_v10 = vld [vmem:[#allocation5 + $0x108] sm:$0xff]  ;;  %1495 = vmatprep.subr.bf16.mxu0 %v1494_v3  ;;  %v95_v14 = vld [vmem:[#allocation5 + $0x10] sm:$0xff]  ;;  %v1498_v16 = vpack.c.bf16 %v112_v13, %v111_v11  ;;  %s1845_s22 = scalar_lea.vmem %s1051_s21, 128  ;;  %p1850_p5 = scmp.lt.s32.totalorder %s1051_s21, %s1051_s21 }
  0x4d   :  { %v1528_v12 = vpack.c.bf16 %v126_v10, %v125_v9  ;;  %v96_v15 = vld [vmem:[#allocation5 + $0x18] sm:$0xff]  ;;  %1497 = vmatpush3.bf16.msra.mxu0 %v1496_v7  ;;  %v143_v18 = vld [vmem:[#allocation5 + $0x190] sm:$0xff]  ;;  %v113_v23 = vld [vmem:[#allocation5 + $0xa0] sm:$0xff]  ;;  %p1846_p4 = scmp.ne.s32.totalorder %s1051_s21, %s1845_s22  ;;  %p1851_p6 = scmp.lt.s32.totalorder %s1845_s22, %s1845_s22 }
  0x4e   :  { %1527 = vmatprep.subr.bf16.mxu1 %v1526_v8  ;;  %v1500_v17 = vpack.c.bf16 %v96_v15, %v95_v14  ;;  %v144_v19 = vld [vmem:[#allocation5 + $0x198] sm:$0xff]  ;;  %v127_v20 = vld [vmem:[#allocation5 + $0x110] sm:$0xff]  ;;  %v114_v24 = vld [vmem:[#allocation5 + $0xa8] sm:$0xff]  ;;  %1499 = vmatprep.subr.bf16.mxu0 %v1498_v16 }
  0x4f   :  { %1529 = vmatpush3.bf16.msra.mxu1 %v1528_v12  ;;  %v1530_v21 = vpack.c.bf16 %v144_v19, %v143_v18  ;;  %v128_v22 = vld [vmem:[#allocation5 + $0x118] sm:$0xff]  ;;  %v1502_v26 = vpack.c.bf16 %v114_v24, %v113_v23  ;;  %v97_v27 = vld [vmem:[#allocation5 + $0x20] sm:$0xff]  ;;  %v98_v28 = vld [vmem:[#allocation5 + $0x28] sm:$0xff]  ;;  %p1852_p7 = por %p1851_p6, %p1850_p5 }
  0x50   :  { %v1532_v25 = vpack.c.bf16 %v128_v22, %v127_v20  ;;  %v145_v29 = vld [vmem:[#allocation5 + $0x1a0] sm:$0xff]  ;;  %v146_v30 = vld [vmem:[#allocation5 + $0x1a8] sm:$0xff]  ;;  %v1504_v33 = vpack.c.bf16 %v98_v28, %v97_v27  ;;  %v115_v35 = vld [vmem:[#allocation5 + $0xb0] sm:$0xff] }
  0x51   :  { %1531 = vmatprep.subr.bf16.mxu1 %v1530_v21  ;;  %v129_v31 = vld [vmem:[#allocation5 + $0x120] sm:$0xff]  ;;  %v130_v32 = vld [vmem:[#allocation5 + $0x128] sm:$0xff]  ;;  %1501 = vmatpush3.bf16.msra.mxu0 %v1500_v17  ;;  %v1534_v34 = vpack.c.bf16 %v146_v30, %v145_v29  ;;  %v116_v36 = vld [vmem:[#allocation5 + $0xb8] sm:$0xff]  ;;  %p1853_p8 = pnand %p1852_p7, %p1846_p4 }
  0x52   :  { %v99_v37 = vld [vmem:[#allocation5 + $0x30] sm:$0xff]  ;;  %1503 = vmatprep.subr.bf16.mxu0 %v1502_v26  ;;  %v1536_v38 = vpack.c.bf16 %v130_v32, %v129_v31  ;;  %v1506_v39 = vpack.c.bf16 %v116_v36, %v115_v35  ;;  %v100_v40 = vld [vmem:[#allocation5 + $0x38] sm:$0xff]  ;;  %v117_v46 = vld [vmem:[#allocation5 + $0xc0] sm:$0xff] }
  0x53   :  { %1533 = vmatpush3.bf16.msra.mxu1 %v1532_v25  ;;  %v147_v41 = vld [vmem:[#allocation5 + $0x1b0] sm:$0xff]  ;;  %v148_v42 = vld [vmem:[#allocation5 + $0x1b8] sm:$0xff]  ;;  %v118_v47 = vld [vmem:[#allocation5 + $0xc8] sm:$0xff]  ;;  %v1508_v48 = vpack.c.bf16 %v100_v40, %v99_v37 }
  0x54   :  { %1535 = vmatprep.subr.bf16.mxu1 %v1534_v34  ;;  %v1538_v43 = vpack.c.bf16 %v148_v42, %v147_v41  ;;  %v131_v44 = vld [vmem:[#allocation5 + $0x130] sm:$0xff]  ;;  %v132_v45 = vld [vmem:[#allocation5 + $0x138] sm:$0xff]  ;;  %v149_v49 = vld [vmem:[#allocation5 + $0x1c0] sm:$0xff]  ;;  %v1510_v52 = vpack.c.bf16 %v118_v47, %v117_v46 }
  0x55   :  { %1505 = vmatpush3.bf16.msra.mxu0 %v1504_v33  ;;  %v150_v50 = vld [vmem:[#allocation5 + $0x1c8] sm:$0xff]  ;;  %v1540_v51 = vpack.c.bf16 %v132_v45, %v131_v44  ;;  %v101_v53 = vld [vmem:[#allocation5 + $0x40] sm:$0xff]  ;;  %v119_v58 = vld [vmem:[#allocation5 + $0xd0] sm:$0xff] }
  0x56   :  { %1507 = vmatprep.subr.bf16.mxu0 %v1506_v39  ;;  %v102_v54 = vld [vmem:[#allocation5 + $0x48] sm:$0xff]  ;;  %v133_v55 = vld [vmem:[#allocation5 + $0x140] sm:$0xff]  ;;  %v1542_v56 = vpack.c.bf16 %v150_v50, %v149_v49  ;;  %v120_v59 = vld [vmem:[#allocation5 + $0xd8] sm:$0xff]  ;;  %v1881_v50 = vmov 0.0|0.0  }
  0x57   :  { %1537 = vmatpush3.bf16.msra.mxu1 %v1536_v38  ;;  %v134_v57 = vld [vmem:[#allocation5 + $0x148] sm:$0xff]  ;;  %v151_v60 = vld [vmem:[#allocation5 + $0x1d0] sm:$0xff]  ;;  %v152_v61 = vld [vmem:[#allocation5 + $0x1d8] sm:$0xff]  ;;  %v1512_v62 = vpack.c.bf16 %v102_v54, %v101_v53  ;;  %v1514_v0 = vpack.c.bf16 %v120_v59, %v119_v58 }
  0x58   :  { %1539 = vmatprep.subr.bf16.mxu1 %v1538_v43  ;;  %v1544_v63 = vpack.c.bf16 %v134_v57, %v133_v55  ;;  %v103_v1 = vld [vmem:[#allocation5 + $0x50] sm:$0xff]  ;;  %v104_v2 = vld [vmem:[#allocation5 + $0x58] sm:$0xff]  ;;  %v1546_v4 = vpack.c.bf16 %v152_v61, %v151_v60  ;;  %v121_v6 = vld [vmem:[#allocation5 + $0xe0] sm:$0xff]  ;;  %v1883_v60 = vmov 0.0  }
  0x59   :  { %1509 = vmatpush3.bf16.msra.mxu0 %v1508_v48  ;;  %v135_v3 = vld [vmem:[#allocation5 + $0x150] sm:$0xff]  ;;  %v136_v5 = vld [vmem:[#allocation5 + $0x158] sm:$0xff]  ;;  %v122_v7 = vld [vmem:[#allocation5 + $0xe8] sm:$0xff]  ;;  %v1516_v10 = vpack.c.bf16 %v104_v2, %v103_v1 }
  0x5a   :  { %1511 = vmatprep.subr.bf16.mxu0 %v1510_v52  ;;  %v153_v8 = vld [vmem:[#allocation5 + $0x1e0] sm:$0xff]  ;;  %v154_v9 = vld [vmem:[#allocation5 + $0x1e8] sm:$0xff]  ;;  %v87_v12 = vld [vmem:[#allocation2 + $0x8] sm:$0xff]  ;;  %v1548_v13 = vpack.c.bf16 %v136_v5, %v135_v3  ;;  %v1518_v14 = vpack.c.bf16 %v122_v7, %v121_v6 }
  0x5b   :  { %1541 = vmatpush3.bf16.msra.mxu1 %v1540_v51  ;;  %v105_v11 = vld [vmem:[#allocation5 + $0x60] sm:$0xff]  ;;  %v106_v15 = vld [vmem:[#allocation5 + $0x68] sm:$0xff]  ;;  %v1550_v18 = vpack.c.bf16 %v154_v9, %v153_v8  ;;  %v123_v19 = vld [vmem:[#allocation5 + $0xf0] sm:$0xff]  ;;  %302 = vmatprep.mubr.f32.mxu0 %v87_v12 }
  0x5c   :  { %1543 = vmatprep.subr.bf16.mxu1 %v1542_v56  ;;  %v137_v16 = vld [vmem:[#allocation5 + $0x160] sm:$0xff]  ;;  %v138_v17 = vld [vmem:[#allocation5 + $0x168] sm:$0xff]  ;;  %v124_v20 = vld [vmem:[#allocation5 + $0xf8] sm:$0xff]  ;;  %v1520_v24 = vpack.c.bf16 %v106_v15, %v105_v11 }
  0x5d   :  { %1513 = vmatpush3.bf16.msra.mxu0 %v1512_v62  ;;  %v89_v21 = vld [vmem:[#allocation2 + $0x18] sm:$0xff]  ;;  %v155_v22 = vld [vmem:[#allocation5 + $0x1f0] sm:$0xff]  ;;  %v156_v23 = vld [vmem:[#allocation5 + $0x1f8] sm:$0xff]  ;;  %v1552_v25 = vpack.c.bf16 %v138_v17, %v137_v16  ;;  %v1522_v26 = vpack.c.bf16 %v124_v20, %v123_v19 }
  0x5e   :  { %1515 = vmatprep.subr.bf16.mxu0 %v1514_v0  ;;  %372 = vmatprep.mubr.f32.mxu1 %v89_v21  ;;  %v107_v27 = vld [vmem:[#allocation5 + $0x70] sm:$0xff]  ;;  %v108_v28 = vld [vmem:[#allocation5 + $0x78] sm:$0xff]  ;;  %v1554_v30 = vpack.c.bf16 %v156_v23, %v155_v22  ;;  %v173_v32 = vld [vmem:[#allocation5 + $0x280] sm:$0xff] }
  0x5f   :  { %1545 = vmatpush3.bf16.msra.mxu1 %v1544_v63  ;;  %v139_v29 = vld [vmem:[#allocation5 + $0x170] sm:$0xff]  ;;  %v140_v31 = vld [vmem:[#allocation5 + $0x178] sm:$0xff]  ;;  %v174_v33 = vld [vmem:[#allocation5 + $0x288] sm:$0xff]  ;;  %v1524_v34 = vpack.c.bf16 %v108_v28, %v107_v27 }
  0x60   :  { %1547 = vmatprep.subr.bf16.mxu1 %v1546_v4  ;;  %v1556_v35 = vpack.c.bf16 %v140_v31, %v139_v29  ;;  %v1558_v36 = vpack.c.bf16 %v174_v33, %v173_v32  ;;  %v157_v37 = vld [vmem:[#allocation5 + $0x200] sm:$0xff]  ;;  %v158_v38 = vld [vmem:[#allocation5 + $0x208] sm:$0xff]  ;;  %v175_v39 = vld [vmem:[#allocation5 + $0x290] sm:$0xff] }
  0x61   :  { %1517 = vmatpush3.bf16.msra.mxu0 %v1516_v10  ;;  %v176_v40 = vld [vmem:[#allocation5 + $0x298] sm:$0xff]  ;;  %v86_v41 = vld [vmem:[#allocation2] sm:$0xff]  ;;  %v1560_v42 = vpack.c.bf16 %v158_v38, %v157_v37  ;;  %v159_v44 = vld [vmem:[#allocation5 + $0x210] sm:$0xff] }
  0x62   :  { %1519 = vmatprep.subr.bf16.mxu0 %v1518_v14  ;;  %v88_v43 = vld [vmem:[#allocation2 + $0x10] sm:$0xff]  ;;  %v1562_v45 = vpack.c.bf16 %v176_v40, %v175_v39  ;;  %v177_v47 = vld [vmem:[#allocation5 + $0x2a0] sm:$0xff]  ;;  %v178_v48 = vld [vmem:[#allocation5 + $0x2a8] sm:$0xff] }
  0x63   :  { %1549 = vmatpush3.bf16.msra.mxu1 %v1548_v13  ;;  %v160_v46 = vld [vmem:[#allocation5 + $0x218] sm:$0xff]  ;;  %v91_v49 = vld [vmem:[#allocation2 + $0x28] sm:$0xff]  ;;  %v189_v51 = vld [vmem:[#allocation5 + $0x300] sm:$0xff]  ;;  %v1566_v55 = vpack.c.bf16 %v178_v48, %v177_v47 }
  0x64   :  { %1551 = vmatprep.subr.bf16.mxu1 %v1550_v18  ;;  %v190_v52 = vld [vmem:[#allocation5 + $0x308] sm:$0xff]  ;;  %v1564_v54 = vpack.c.bf16 %v160_v46, %v159_v44  ;;  %v161_v56 = vld [vmem:[#allocation5 + $0x220] sm:$0xff]  ;;  %v179_v58 = vld [vmem:[#allocation5 + $0x2b0] sm:$0xff] }
  0x65   :  { %1521 = vmatpush3.bf16.msra.mxu0 %v1520_v24  ;;  %v1591_v53 = vpack.c.bf16 %v190_v52, %v189_v51  ;;  %v162_v57 = vld [vmem:[#allocation5 + $0x228] sm:$0xff]  ;;  %v180_v59 = vld [vmem:[#allocation5 + $0x2b8] sm:$0xff]  ;;  %v163_v0 = vld [vmem:[#allocation5 + $0x230] sm:$0xff] }
  0x66   :  { %1523 = vmatprep.subr.bf16.mxu0 %v1522_v26  ;;  %v92_v61 = vld [vmem:[#allocation2 + $0x30] sm:$0xff]  ;;  %v1568_v62 = vpack.c.bf16 %v162_v57, %v161_v56  ;;  %v1570_v63 = vpack.c.bf16 %v180_v59, %v179_v58  ;;  %v181_v2 = vld [vmem:[#allocation5 + $0x2c0] sm:$0xff]  ;;  %v182_v3 = vld [vmem:[#allocation5 + $0x2c8] sm:$0xff] }
  0x67   :  { %1553 = vmatpush3.bf16.msra.mxu1 %v1552_v25  ;;  %v164_v1 = vld [vmem:[#allocation5 + $0x238] sm:$0xff]  ;;  %v1574_v5 = vpack.c.bf16 %v182_v3, %v181_v2  ;;  %v165_v6 = vld [vmem:[#allocation5 + $0x240] sm:$0xff]  ;;  %v166_v7 = vld [vmem:[#allocation5 + $0x248] sm:$0xff] }
  0x68   :  { %1555 = vmatprep.subr.bf16.mxu1 %v1554_v30  ;;  %v1572_v4 = vpack.c.bf16 %v164_v1, %v163_v0  ;;  %v183_v8 = vld [vmem:[#allocation5 + $0x2d0] sm:$0xff]  ;;  %v184_v9 = vld [vmem:[#allocation5 + $0x2d8] sm:$0xff]  ;;  %v1576_v10 = vpack.c.bf16 %v166_v7, %v165_v6  ;;  %v185_v14 = vld [vmem:[#allocation5 + $0x2e0] sm:$0xff] }
  0x69   :  { %1525 = vmatpush3.bf16.msra.mxu0 %v1524_v34  ;;  %v1578_v11 = vpack.c.bf16 %v184_v9, %v183_v8  ;;  %v167_v12 = vld [vmem:[#allocation5 + $0x250] sm:$0xff]  ;;  %v168_v13 = vld [vmem:[#allocation5 + $0x258] sm:$0xff]  ;;  %v186_v15 = vld [vmem:[#allocation5 + $0x2e8] sm:$0xff] }
  0x6a   :  { %1559 = vmatprep.subr.bf16.mxu0 %v1558_v36  ;;  %v1580_v16 = vpack.c.bf16 %v168_v13, %v167_v12  ;;  %v1582_v17 = vpack.c.bf16 %v186_v15, %v185_v14  ;;  %v169_v18 = vld [vmem:[#allocation5 + $0x260] sm:$0xff]  ;;  %v170_v19 = vld [vmem:[#allocation5 + $0x268] sm:$0xff]  ;;  %v187_v20 = vld [vmem:[#allocation5 + $0x2f0] sm:$0xff] }
  0x6b   :  { %1557 = vmatpush3.bf16.msra.mxu1 %v1556_v35  ;;  %v188_v21 = vld [vmem:[#allocation5 + $0x2f8] sm:$0xff]  ;;  %v1584_v22 = vpack.c.bf16 %v170_v19, %v169_v18  ;;  %v171_v24 = vld [vmem:[#allocation5 + $0x270] sm:$0xff]  ;;  %v90_v27 = vld [vmem:[#allocation2 + $0x20] sm:$0xff] }
  0x6c   :  { %1590 = vmatprep.subr.bf16.mxu1 %v1881_v50  ;;  %303 = vmatmul.mubr.f32.vlgmr.msra.gmra.mrb[0].mxu0 %v86_v41  ;;  %v1586_v23 = vpack.c.bf16 %v188_v21, %v187_v20  ;;  %v172_v25 = vld [vmem:[#allocation5 + $0x278] sm:$0xff]  ;;  %v191_v28 = vld [vmem:[#allocation7] sm:$0xff]  ;;  %v193_v30 = vld [vmem:[#allocation7 + $0x10] sm:$0xff] }
  0x6d   :  { %1561 = vmatpush3.bf16.msra.mxu0 %v1560_v42  ;;  %442 = vmatprep.mubr.f32.mxu0 %v91_v49  ;;  %v1588_v26 = vpack.c.bf16 %v172_v25, %v171_v24  ;;  %v192_v29 = vld [vmem:[#allocation7 + $0x8] sm:$0xff]  ;;  %v194_v32 = vld [vmem:[#allocation7 + $0x18] sm:$0xff]  ;;  %v195_v34 = vld [vmem:[#allocation7 + $0x20] sm:$0xff] }
  0x6e   :  { %373 = vmatmul.mubr.f32.vlgmr.msra.gmra.mrb[0].mxu1 %v88_v43  ;;  %1563 = vmatprep.subr.bf16.mxu0 %v1562_v45  ;;  %v2001_v31 = vpack.c.bf16 %v192_v29, %v191_v28  ;;  %v2004_v33 = vpack.c.bf16 %v194_v32, %v193_v30  ;;  %v196_v35 = vld [vmem:[#allocation7 + $0x28] sm:$0xff]  ;;  %v197_v37 = vld [vmem:[#allocation7 + $0x30] sm:$0xff]  ;;  %v198_v38 = vld [vmem:[#allocation7 + $0x38] sm:$0xff] }
  0x6f   :  { %1592 = vmatpush3.bf16.msra.mxu1 %v1591_v53  ;;  %1281 = vmatprep.mubr.msk.f32.mxu1 %vm1882_vm0, %v1883_v60  ;;  %v2010_v36 = vpack.c.bf16 %v196_v35, %v195_v34  ;;  %v2016_v39 = vpack.c.bf16 %v198_v38, %v197_v37  ;;  %v199_v40 = vld [vmem:[#allocation7 + $0x40] sm:$0xff]  ;;  %v200_v41 = vld [vmem:[#allocation7 + $0x48] sm:$0xff]  ;;  %v201_v43 = vld [vmem:[#allocation7 + $0x50] sm:$0xff] }
  0x70   :  { %1593 = vmatprep.subr.bf16.mxu1 %v1881_v50  ;;  %v2022_v42 = vpack.c.bf16 %v200_v41, %v199_v40  ;;  %v202_v44 = vld [vmem:[#allocation7 + $0x58] sm:$0xff]  ;;  %v203_v46 = vld [vmem:[#allocation7 + $0x60] sm:$0xff]  ;;  %v204_v47 = vld [vmem:[#allocation7 + $0x68] sm:$0xff] }
  0x71   :  { %1565 = vmatpush3.bf16.msra.mxu0 %v1564_v54  ;;  %v2028_v45 = vpack.c.bf16 %v202_v44, %v201_v43  ;;  %v2037_v48 = vpack.c.bf16 %v204_v47, %v203_v46  ;;  %v205_v49 = vld [vmem:[#allocation7 + $0x70] sm:$0xff]  ;;  %v206_v51 = vld [vmem:[#allocation7 + $0x78] sm:$0xff] }
  0x72   :  { %1567 = vmatprep.subr.bf16.mxu0 %v1566_v55  ;;  %1282 = vmatmul.mubr.msk.f32.vlgmr.msra.gmra.mrb[2].mxu1 %vm234_vm1, %v92_v61  ;;  %v2043_v52 = vpack.c.bf16 %v206_v51, %v205_v49  ;;  %v1061_v54 = vld [vmem:[%s2161_s2] ss:$0 sm:$0xff] }
  0x73   :  { %1316 = vmatprep.mubr.msk.f32.mxu1 %vm1882_vm0, %v1883_v60  ;;  %1595 = vmatpush3.bf16.msra.mxu1 %v2001_v31  ;;  %v2073_v7 = vld [vmem:[%s2163_s4] ss:$0 sm:$0xff] }
  0x74   :  { %1596 = vmatprep.subr.bf16.mxu1 %v1881_v50  ;;  %v2079_v21 = vld [vmem:[%s2164_s5] ss:$0 sm:$0xff] }
  0x75   :  { %1569 = vmatpush3.bf16.msra.mxu0 %v1568_v62 }
  0x76   :  { %1571 = vmatprep.subr.bf16.mxu0 %v1570_v63 }
  0x77   :  { %1598 = vmatpush3.bf16.msra.mxu1 %v2004_v33 }
  0x78   :  { %1599 = vmatprep.subr.bf16.mxu1 %v1881_v50 }
  0x79   :  { %1573 = vmatpush3.bf16.msra.mxu0 %v1572_v4 }
  0x7a   :  { %1575 = vmatprep.subr.bf16.mxu0 %v1574_v5 }
  0x7b   :  { %1601 = vmatpush3.bf16.msra.mxu1 %v2010_v36 }
  0x7c   :  { %1602 = vmatprep.subr.bf16.mxu1 %v1881_v50 }
  0x7d   :  { %1577 = vmatpush3.bf16.msra.mxu0 %v1576_v10 }
  0x7e   :  { %1579 = vmatprep.subr.bf16.mxu0 %v1578_v11 }
  0x7f   :  { %1604 = vmatpush3.bf16.msra.mxu1 %v2016_v39 }
  0x80   :  { %1605 = vmatprep.subr.bf16.mxu1 %v1881_v50 }
  0x81   :  { %1581 = vmatpush3.bf16.msra.mxu0 %v1580_v16 }
  0x82   :  { %1583 = vmatprep.subr.bf16.mxu0 %v1582_v17 }
  0x83   :  { %1607 = vmatpush3.bf16.msra.mxu1 %v2022_v42 }
  0x84   :  { %1608 = vmatprep.subr.bf16.mxu1 %v1881_v50 }
  0x85   :  { %1585 = vmatpush3.bf16.msra.mxu0 %v1584_v22 }
  0x86   :  { %1587 = vmatprep.subr.bf16.mxu0 %v1586_v23  ;;  %v2084_v23 = vld [vmem:[%s2165_s6] ss:$0 sm:$0xff] }
  0x87   :  { %1610 = vmatpush3.bf16.msra.mxu1 %v2028_v45 }
  0x88   :  { %1611 = vmatprep.subr.bf16.mxu1 %v1881_v50 }
  0x89   :  { %1589 = vmatpush3.bf16.msra.mxu0 %v1588_v26 }
  0x8a   :  { %1617 = vmatprep.subr.bf16.mxu0 %v1881_v50 }
  0x8b   :  { %1613 = vmatpush3.bf16.msra.mxu1 %v2037_v48 }
  0x8c   :  { %443 = vmatmul.mubr.f32.vlgmr.msra.gmra.mrb[2].mxu0 %v90_v27  ;;  %1614 = vmatprep.subr.bf16.mxu1 %v1881_v50 }
  0x8d   :  { %1351 = vmatprep.mubr.msk.f32.mxu0 %vm1882_vm0, %v1883_v60  ;;  %1619 = vmatpush3.bf16.msra.mxu0 %v2001_v31 }
  0x8e   :  { %1620 = vmatprep.subr.bf16.mxu0 %v1881_v50 }
  0x8f   :  { %1616 = vmatpush3.bf16.msra.mxu1 %v2043_v52 }
  0x90   :  { %1641 = vmatprep.subr.bf16.mxu1 %v1881_v50 }
  0x91   :  { %1622 = vmatpush3.bf16.msra.mxu0 %v2004_v33 }
  0x92   :  { %1623 = vmatprep.subr.bf16.mxu0 %v1881_v50 }
  0x95   :  { %1625 = vmatpush3.bf16.msra.mxu0 %v2010_v36 }
  0x96   :  { %1626 = vmatprep.subr.bf16.mxu0 %v1881_v50 }
  0x99   :  { %1628 = vmatpush3.bf16.msra.mxu0 %v2016_v39 }
  0x9a   :  { %1629 = vmatprep.subr.bf16.mxu0 %v1881_v50 }
  0x9d   :  { %1631 = vmatpush3.bf16.msra.mxu0 %v2022_v42 }
  0x9e   :  { %1632 = vmatprep.subr.bf16.mxu0 %v1881_v50 }
  0xa1   :  { %1634 = vmatpush3.bf16.msra.mxu0 %v2028_v45 }
  0xa2   :  { %1635 = vmatprep.subr.bf16.mxu0 %v1881_v50 }
  0xa5   :  { %1637 = vmatpush3.bf16.msra.mxu0 %v2037_v48 }
  0xa6   :  { %1638 = vmatprep.subr.bf16.mxu0 %v1881_v50 }
  0xa9   :  { %1640 = vmatpush3.bf16.msra.mxu0 %v2043_v52 }
  0xaa   :  { %1665 = vmatprep.subr.bf16.mxu0 %v1881_v50 }
 0x13f   :  { %v1099_v53 = vpop.f32.mrb[0].mxu0 }
 0x140   :  { %v1100_v55 = vpop.f32.mrb[1].mxu0 }
 0x141   :  { %v1134_v56 = vpop.f32.mrb[0].mxu1  ;;  %v1101_v57 = vadd.f32 %v1100_v55, %v1099_v53 }
 0x142   :  { %v1135_v58 = vpop.f32.mrb[1].mxu1 }
 0x143   :  { %v1136_v59 = vadd.f32 %v1135_v58, %v1134_v56  ;;  %v305_v61 = vadd.f32 %v1101_v57, %v1061_v54 }
 0x145   :  { %v375_v62 = vadd.f32 %v1136_v59, %v305_v61  ;;  %v514_v63 = vpop.f32.mrb[2].mxu1 }
 0x146   :  { %v1283_v0 = vpop.f32.mrb[3].mxu1 }
 0x15f   :  { %v1169_v1 = vpop.f32.mrb[2].mxu0 }
 0x160   :  { %v1170_v2 = vpop.f32.mrb[3].mxu0 }
 0x161   :  { %v1171_v3 = vadd.f32 %v1170_v2, %v1169_v1 }
 0x163   :  { %v445_v4 = vadd.f32 %v1171_v3, %v375_v62 }
 0x165   :  { %v515_v5 = vadd.f32 %v514_v63, %v445_v4 }
 0x167   :  { %v518_v6 = vmax.f32 %v515_v5, 0.0 }
 0x169   :  { %1317 = vmatmul.mubr.f32.vlgmr.msra.gmra.mrb[4].mxu1 %v518_v6 }
 0x16a   :  { %1643 = vmatpush3.bf16.msra.mxu1 %v2001_v31  ;;  %1386 = vmatprep.mubr.msk.f32.mxu1 %vm1882_vm0, %v1883_v60 }
 0x16b   :  { %1644 = vmatprep.subr.bf16.mxu1 %v1881_v50 }
 0x16e   :  { %1646 = vmatpush3.bf16.msra.mxu1 %v2004_v33 }
 0x16f   :  { %1647 = vmatprep.subr.bf16.mxu1 %v1881_v50 }
 0x172   :  { %1649 = vmatpush3.bf16.msra.mxu1 %v2010_v36 }
 0x173   :  { %1650 = vmatprep.subr.bf16.mxu1 %v1881_v50 }
 0x176   :  { %1652 = vmatpush3.bf16.msra.mxu1 %v2016_v39 }
 0x177   :  { %1653 = vmatprep.subr.bf16.mxu1 %v1881_v50 }
 0x17a   :  { %1655 = vmatpush3.bf16.msra.mxu1 %v2022_v42 }
 0x17b   :  { %1656 = vmatprep.subr.bf16.mxu1 %v1881_v50 }
 0x17e   :  { %1658 = vmatpush3.bf16.msra.mxu1 %v2028_v45 }
 0x17f   :  { %1659 = vmatprep.subr.bf16.mxu1 %v1881_v50 }
 0x182   :  { %1661 = vmatpush3.bf16.msra.mxu1 %v2037_v48 }
 0x183   :  { %1662 = vmatprep.subr.bf16.mxu1 %v1881_v50 }
 0x186   :  { %1664 = vmatpush3.bf16.msra.mxu1 %v2043_v52 }
 0x187   :  { %1689 = vmatprep.subr.bf16.mxu1 %v1881_v50 }
 0x23c   :  { %v591_v8 = vpop.f32.mrb[4].mxu1 }
 0x23d   :  { %v592_v9 = vadd.f32 %v2073_v7, %v591_v8  ;;  %v1318_v10 = vpop.f32.mrb[5].mxu1 }
 0x23f   :  { %v595_v11 = vmul.f32 %v592_v9, %v592_v9 }
 0x241   :  { %v596_v12 = vadd.f32 %v595_v11, %v592_v9 }
 0x243   :  { %597 = vadd.xlane.f32.xlu0 %v596_v12 }
 0x2d0   :  { %v598_v13 = vpop.xlane.xlu0 %597 }
 0x2d1   :  { %v599_v14 = vmul.f32 0.0078125, %v598_v13 }
 0x2d3   :  { %v600_v15 = vsub.f32 %v596_v12, %v599_v14 }
 0x2d5   :  { %v601_v16 = vmul.f32 %v600_v15, %v600_v15 }
 0x2d7   :  { %602 = vadd.xlane.f32.xlu0 %v601_v16 }
 0x364   :  { %v603_v17 = vpop.xlane.xlu0 %602 }
 0x365   :  { %v604_v18 = vmul.f32 0.0078125, %v603_v17 }
 0x367   :  { %v605_v19 = vadd.f32 1e-05, %v604_v18 }
 0x369   :  { %1747 = vrsqrt.f32 %v605_v19 }
 0x373   :  { %v1748_v20 = vpop.eup %1747 }
 0x374   :  { %v607_v22 = vmul.f32 %v1748_v20, %v600_v15 }
 0x376   :  { %v614_v24 = vmul.f32 %v2079_v21, %v607_v22  ;;  %v207_v22 = vld [vmem:[#allocation8] sm:$0xff] }
 0x378   :  { %v621_v25 = vadd.f32 %v2084_v23, %v614_v24  ;;  %v208_v24 = vld [vmem:[#allocation8 + $0x8] sm:$0xff] }
 0x37a   :  { %v622_v26 = vmax.f32 %v621_v25, 0.0  ;;  %v209_v25 = vld [vmem:[#allocation8 + $0x10] sm:$0xff] }
 0x37c   :  { %1352 = vmatmul.mubr.f32.vlgmr.msra.gmra.mrb[4].mxu0 %v622_v26  ;;  %v1714_v26 = vpack.c.bf16 %v208_v24, %v207_v22 }
 0x37d   :  { %1667 = vmatpush3.bf16.msra.mxu0 %v2001_v31  ;;  %1421 = vmatprep.mubr.msk.f32.mxu0 %vm1882_vm0, %v1883_v60 }
 0x37e   :  { %1668 = vmatprep.subr.bf16.mxu0 %v1881_v50 }
 0x381   :  { %1670 = vmatpush3.bf16.msra.mxu0 %v2004_v33 }
 0x382   :  { %1671 = vmatprep.subr.bf16.mxu0 %v1881_v50 }
 0x385   :  { %1673 = vmatpush3.bf16.msra.mxu0 %v2010_v36 }
 0x386   :  { %1674 = vmatprep.subr.bf16.mxu0 %v1881_v50 }
 0x389   :  { %1676 = vmatpush3.bf16.msra.mxu0 %v2016_v39 }
 0x38a   :  { %1677 = vmatprep.subr.bf16.mxu0 %v1881_v50 }
 0x38d   :  { %1679 = vmatpush3.bf16.msra.mxu0 %v2022_v42 }
 0x38e   :  { %1680 = vmatprep.subr.bf16.mxu0 %v1881_v50 }
 0x391   :  { %1682 = vmatpush3.bf16.msra.mxu0 %v2028_v45 }
 0x392   :  { %1683 = vmatprep.subr.bf16.mxu0 %v1881_v50 }
 0x395   :  { %1685 = vmatpush3.bf16.msra.mxu0 %v2037_v48 }
 0x396   :  { %1686 = vmatprep.subr.bf16.mxu0 %v1881_v50 }
 0x399   :  { %1688 = vmatpush3.bf16.msra.mxu0 %v2043_v52 }
 0x39a   :  { %1713 = vmatprep.subr.bf16.mxu0 %v1881_v50 }
 0x44f   :  { %v689_v27 = vpop.f32.mrb[4].mxu0 }
 0x450   :  { %v690_v28 = vadd.f32 %v2073_v7, %v689_v27  ;;  %v1353_v29 = vpop.f32.mrb[5].mxu0  ;;  %v210_v27 = vld [vmem:[#allocation8 + $0x18] sm:$0xff] }
 0x452   :  { %v693_v30 = vmul.f32 %v690_v28, %v690_v28 }
 0x454   :  { %v694_v32 = vadd.f32 %v693_v30, %v690_v28  ;;  %v1717_v28 = vpack.c.bf16 %v210_v27, %v209_v25 }
 0x456   :  { %695 = vadd.xlane.f32.xlu1 %v694_v32 }
 0x4e3   :  { %v696_v34 = vpop.xlane.xlu1 %695 }
 0x4e4   :  { %v697_v35 = vmul.f32 0.0078125, %v696_v34  ;;  %v211_v34 = vld [vmem:[#allocation8 + $0x20] sm:$0xff] }
 0x4e6   :  { %v698_v37 = vsub.f32 %v694_v32, %v697_v35  ;;  %v212_v35 = vld [vmem:[#allocation8 + $0x28] sm:$0xff] }
 0x4e8   :  { %v699_v38 = vmul.f32 %v698_v37, %v698_v37 }
 0x4ea   :  { %700 = vadd.xlane.f32.xlu1 %v699_v38  ;;  %v213_v38 = vld [vmem:[#allocation8 + $0x30] sm:$0xff] }
 0x577   :  { %v701_v40 = vpop.xlane.xlu1 %700 }
 0x578   :  { %v702_v41 = vmul.f32 0.0078125, %v701_v40  ;;  %v214_v40 = vld [vmem:[#allocation8 + $0x38] sm:$0xff] }
 0x57a   :  { %v703_v43 = vadd.f32 1e-05, %v702_v41  ;;  %v1723_v41 = vpack.c.bf16 %v214_v40, %v213_v38 }
 0x57c   :  { %1749 = vrsqrt.f32 %v703_v43  ;;  %v215_v43 = vld [vmem:[#allocation8 + $0x40] sm:$0xff] }
 0x586   :  { %v1750_v44 = vpop.eup %1749 }
 0x587   :  { %v705_v46 = vmul.f32 %v1750_v44, %v698_v37  ;;  %v1720_v37 = vpack.c.bf16 %v212_v35, %v211_v34  ;;  %v216_v44 = vld [vmem:[#allocation8 + $0x48] sm:$0xff] }
 0x589   :  { %v706_v47 = vmul.f32 %v2079_v21, %v705_v46  ;;  %v1726_v46 = vpack.c.bf16 %v216_v44, %v215_v43 }
 0x58b   :  { %v707_v49 = vadd.f32 %v2084_v23, %v706_v47  ;;  %v217_v47 = vld [vmem:[#allocation8 + $0x50] sm:$0xff] }
 0x58d   :  { %v708_v51 = vmax.f32 %v707_v49, 0.0  ;;  %v218_v49 = vld [vmem:[#allocation8 + $0x58] sm:$0xff] }
 0x58f   :  { %1387 = vmatmul.mubr.f32.vlgmr.msra.gmra.mrb[6].mxu1 %v708_v51  ;;  %v1729_v51 = vpack.c.bf16 %v218_v49, %v217_v47 }
 0x590   :  { %1691 = vmatpush3.bf16.msra.mxu1 %v2001_v31  ;;  %1456 = vmatprep.mubr.msk.f32.mxu1 %vm1882_vm0, %v1883_v60 }
 0x591   :  { %1692 = vmatprep.subr.bf16.mxu1 %v1881_v50 }
 0x594   :  { %1694 = vmatpush3.bf16.msra.mxu1 %v2004_v33 }
 0x595   :  { %1695 = vmatprep.subr.bf16.mxu1 %v1881_v50 }
 0x598   :  { %1697 = vmatpush3.bf16.msra.mxu1 %v2010_v36 }
 0x599   :  { %1698 = vmatprep.subr.bf16.mxu1 %v1881_v50 }
 0x59c   :  { %1700 = vmatpush3.bf16.msra.mxu1 %v2016_v39 }
 0x59d   :  { %1701 = vmatprep.subr.bf16.mxu1 %v1881_v50 }
 0x5a0   :  { %1703 = vmatpush3.bf16.msra.mxu1 %v2022_v42 }
 0x5a1   :  { %1704 = vmatprep.subr.bf16.mxu1 %v1881_v50 }
 0x5a4   :  { %1706 = vmatpush3.bf16.msra.mxu1 %v2028_v45 }
 0x5a5   :  { %1707 = vmatprep.subr.bf16.mxu1 %v1881_v50 }
 0x5a8   :  { %1709 = vmatpush3.bf16.msra.mxu1 %v2037_v48 }
 0x5a9   :  { %1710 = vmatprep.subr.bf16.mxu1 %v1881_v50 }
 0x5ac   :  { %1712 = vmatpush3.bf16.msra.mxu1 %v2043_v52 }
 0x662   :  { %v775_v31 = vpop.f32.mrb[6].mxu1 }
 0x663   :  { %v776_v33 = vadd.f32 %v2073_v7, %v775_v31  ;;  %v1388_v36 = vpop.f32.mrb[7].mxu1  ;;  %v219_v31 = vld [vmem:[#allocation8 + $0x60] sm:$0xff] }
 0x665   :  { %v779_v39 = vmul.f32 %v776_v33, %v776_v33 }
 0x667   :  { %v780_v53 = vadd.f32 %v779_v39, %v776_v33  ;;  %v220_v33 = vld [vmem:[#allocation8 + $0x68] sm:$0xff]  ;;  %v221_v39 = vld [vmem:[#allocation8 + $0x70] sm:$0xff] }
 0x668   :  { %v1732_v36 = vpack.c.bf16 %v220_v33, %v219_v31 }
 0x669   :  { %781 = vadd.xlane.f32.xlu0 %v780_v53 }
 0x6f6   :  { %v782_v42 = vpop.xlane.xlu0 %781 }
 0x6f7   :  { %v783_v54 = vmul.f32 0.0078125, %v782_v42 }
 0x6f9   :  { %v784_v55 = vsub.f32 %v780_v53, %v783_v54  ;;  %v222_v53 = vld [vmem:[#allocation8 + $0x78] sm:$0xff] }
 0x6fa   :  { %v1735_v42 = vpack.c.bf16 %v222_v53, %v221_v39 }
 0x6fb   :  { %v785_v56 = vmul.f32 %v784_v55, %v784_v55 }
 0x6fd   :  { %786 = vadd.xlane.f32.xlu1 %v785_v56 }
 0x78a   :  { %v787_v45 = vpop.xlane.xlu1 %786 }
 0x78b   :  { %v788_v57 = vmul.f32 0.0078125, %v787_v45 }
 0x78d   :  { %v789_v58 = vadd.f32 1e-05, %v788_v57 }
 0x78f   :  { %1751 = vrsqrt.f32 %v789_v58 }
 0x799   :  { %v1752_v48 = vpop.eup %1751 }
 0x79a   :  { %v791_v59 = vmul.f32 %v1752_v48, %v784_v55 }
 0x79c   :  { %v792_v52 = vmul.f32 %v2079_v21, %v791_v59 }
 0x79e   :  { %v793_v61 = vadd.f32 %v2084_v23, %v792_v52  ;;  %v1066_v52 = vld [vmem:[%s2167_s8] ss:$0 sm:$0xff] }
 0x7a0   :  { %v794_v62 = vmax.f32 %v793_v61, 0.0 }
 0x7a2   :  { %1422 = vmatmul.mubr.f32.vlgmr.msra.gmra.mrb[6].mxu0 %v794_v62 }
 0x7a3   :  { %1491 = vmatprep.mubr.msk.f32.mxu0 %vm1882_vm0, %v1883_v60  ;;  %1715 = vmatpush3.bf16.msra.mxu0 %v1714_v26 }
 0x7a4   :  { %1716 = vmatprep.subr.bf16.mxu0 %v1881_v50 }
 0x7a7   :  { %1718 = vmatpush3.bf16.msra.mxu0 %v1717_v28 }
 0x7a8   :  { %1719 = vmatprep.subr.bf16.mxu0 %v1881_v50 }
 0x7ab   :  { %1721 = vmatpush3.bf16.msra.mxu0 %v1720_v37 }
 0x7ac   :  { %1722 = vmatprep.subr.bf16.mxu0 %v1881_v50 }
 0x7af   :  { %1724 = vmatpush3.bf16.msra.mxu0 %v1723_v41 }
 0x7b0   :  { %1725 = vmatprep.subr.bf16.mxu0 %v1881_v50 }
 0x7b3   :  { %1727 = vmatpush3.bf16.msra.mxu0 %v1726_v46 }
 0x7b4   :  { %1728 = vmatprep.subr.bf16.mxu0 %v1881_v50 }
 0x7b7   :  { %1730 = vmatpush3.bf16.msra.mxu0 %v1729_v51 }
 0x7b8   :  { %1731 = vmatprep.subr.bf16.mxu0 %v1881_v50 }
 0x7bb   :  { %1733 = vmatpush3.bf16.msra.mxu0 %v1732_v36 }
 0x7bc   :  { %1734 = vmatprep.subr.bf16.mxu0 %v1881_v50 }
 0x7bf   :  { %1736 = vmatpush3.bf16.msra.mxu0 %v1735_v42 }
 0x875   :  { %v861_v63 = vpop.f32.mrb[6].mxu0 }
 0x876   :  { %v862_v0 = vadd.f32 %v2073_v7, %v861_v63  ;;  %v1423_v1 = vpop.f32.mrb[7].mxu0 }
 0x878   :  { %v865_v2 = vmul.f32 %v862_v0, %v862_v0 }
 0x87a   :  { %v866_v3 = vadd.f32 %v865_v2, %v862_v0 }
 0x87c   :  { %867 = vadd.xlane.f32.xlu0 %v866_v3 }
 0x909   :  { %v868_v4 = vpop.xlane.xlu0 %867 }
 0x90a   :  { %v869_v5 = vmul.f32 0.0078125, %v868_v4 }
 0x90c   :  { %v870_v6 = vsub.f32 %v866_v3, %v869_v5 }
 0x90e   :  { %v871_v8 = vmul.f32 %v870_v6, %v870_v6 }
 0x910   :  { %872 = vadd.xlane.f32.xlu1 %v871_v8 }
 0x99d   :  { %v873_v9 = vpop.xlane.xlu1 %872 }
 0x99e   :  { %v874_v10 = vmul.f32 0.0078125, %v873_v9 }
 0x9a0   :  { %v875_v11 = vadd.f32 1e-05, %v874_v10 }
 0x9a2   :  { %1753 = vrsqrt.f32 %v875_v11 }
 0x9ac   :  { %v1754_v12 = vpop.eup %1753 }
 0x9ad   :  { %v877_v13 = vmul.f32 %v1754_v12, %v870_v6 }
 0x9af   :  { %v878_v60 = vmul.f32 %v2079_v21, %v877_v13 }
 0x9b1   :  { %v879_v14 = vadd.f32 %v2084_v23, %v878_v60 }
 0x9b3   :  { %v880_v15 = vmax.f32 %v879_v14, 0.0 }
 0x9b5   :  { %1457 = vmatmul.mubr.f32.vlgmr.msra.gmra.mrb[8].mxu1 %v880_v15 }
 0xa88   :  { %v947_v16 = vpop.f32.mrb[8].mxu1 }
 0xa89   :  { %v948_v17 = vadd.f32 %v2073_v7, %v947_v16  ;;  %v1458_v18 = vpop.f32.mrb[9].mxu1 }
 0xa8b   :  { %v951_v19 = vmul.f32 %v948_v17, %v948_v17 }
 0xa8d   :  { %v952_v20 = vadd.f32 %v951_v19, %v948_v17 }
 0xa8f   :  { %953 = vadd.xlane.f32.xlu0 %v952_v20 }
 0xb1c   :  { %v954_v29 = vpop.xlane.xlu0 %953 }
 0xb1d   :  { %v955_v30 = vmul.f32 0.0078125, %v954_v29 }
 0xb1f   :  { %v956_v32 = vsub.f32 %v952_v20, %v955_v30 }
 0xb21   :  { %v957_v7 = vmul.f32 %v956_v32, %v956_v32 }
 0xb23   :  { %958 = vadd.xlane.f32.xlu1 %v957_v7 }
 0xbb0   :  { %v959_v54 = vpop.xlane.xlu1 %958 }
 0xbb1   :  { %v960_v55 = vmul.f32 0.0078125, %v959_v54 }
 0xbb3   :  { %v961_v56 = vadd.f32 1e-05, %v960_v55 }
 0xbb5   :  { %1755 = vrsqrt.f32 %v961_v56 }
 0xbbf   :  { %v1756_v45 = vpop.eup %1755 }
 0xbc0   :  { %v963_v57 = vmul.f32 %v1756_v45, %v956_v32 }
 0xbc2   :  { %v964_v58 = vmul.f32 %v2079_v21, %v963_v57 }
 0xbc4   :  { %v965_v48 = vadd.f32 %v2084_v23, %v964_v58 }
 0xbc6   :  { %v966_v59 = vmax.f32 %v965_v48, 0.0 }
 0xbc8   :  { %1492 = vmatmul.mubr.f32.vlgmr.msra.gmra.mrb[8].mxu0 %v966_v59 }
 0xc9b   :  { %v1039_v50 = vpop.f32.mrb[8].mxu0 }
 0xc9c   :  { %v1040_v61 = vadd.f32 %v1066_v52, %v1039_v50  ;;  %v1493_v62 = vpop.f32.mrb[9].mxu0 }
 0xc9e   :  { %1043 = vst [vmem:[#allocation10] sm:$0xff] %v1040_v61 }
 0xc9f   :  { %1856 = shalt.err (!%p1853_p8)
}
 0xca0   :  { %s1857_s0 = scalar_lea.hbm %s2168_s9, 128 }
 0xca1   :  { %p1858_p9 = scmp.ne.s32.totalorder %s2168_s9, %s1857_s0  ;;  %p1861_p10 = scmp.lt.u32.totalorder %s1857_s0, %s2168_s9 }
 0xca3   :  { %p1863_p11 = pnand %p1861_p10, %p1858_p9 }
 0xca5   :  { %1866 = shalt.err (!%p1863_p11)
}
 0xca6   :  { %1053 = dma.vmem_to_hbm [thread:$0]  %s1051_s21, 128, %s2168_s9, [#allocation4]  }
 0xca7   :  { %1873 = dma.done.wait [#allocation4], 128  }
 0xca8   :  { %1874 = vsyncadd [#allocation4], 4294967168 }
 0xca9   :  { %1057 = vsyncpa [#allocation3], 1 }
 0xcaa   :  { %1058 = vsyncpa [#allocation6], 1 }
 0xcab   :  { %1059 = vsyncpa [#allocation9], 1 }
 0xcac   :  { %1060 = vsyncpa [#allocation4], 1 }

</bundles_post_ra>
